<compile_context>
chip_gen: v7x
topology: tpu7x:2x2x1
jax: 0.10.0
libtpu: 0.0.40
codegen_flags: <defaults>
</compile_context>

<pallas_src>
import functools

import jax
import jax.numpy as jnp
from jax import lax
from jax.experimental import pallas as pl
from jax.experimental.pallas import tpu as pltpu

EPS = 1e-6  # GeM eps


def _round_up(x, m):
    return (x + m - 1) // m * m


# --------------------------------------------------------------------------
# Fused kernel: conv-matmul + bias + ReLU + GeM(sum x^p) + (last tile) head
# Layout: spatial (S) is the lane/minor dimension everywhere.
# --------------------------------------------------------------------------
def _fused_conv_gem_head_kernel(
    patch_ref,   # (1, K, TS)    bf16   im2col patches (K-major, spatial-minor)
    w_ref,       # (OutC, K)     bf16   conv weight, transposed
    b_ref,       # (OutC, 1)     f32    conv bias
    hw_ref,      # (OutC, 1)     f32    head weight (column vector)
    p_ref,       # (1,)          f32    SMEM  GeM p
    hb_ref,      # (1,)          f32    SMEM  head bias
    o_ref,       # (1, 1, 1)     f32    logit for this batch element
    acc_ref,     # (OutC, TS)    f32    VMEM running sum of x^p over spatial
    *, s_valid, last_valid):
    s = pl.program_id(1)
    n_s = pl.num_programs(1)

    @pl.when(s == 0)
    def _():
        acc_ref[...] = jnp.zeros_like(acc_ref)

    # Stem conv tile on the MXU, f32 accumulation, spatial in the lanes.
    x = jnp.dot(w_ref[...], patch_ref[0], preferred_element_type=jnp.float32)
    # bias + ReLU + GeM clamp(min=eps)  ==  max(x + b, eps) since eps > 0.
    x = jnp.maximum(x + b_ref[...], EPS)

    p = p_ref[0]
    xp = jnp.exp(p * jnp.log(x))                       # x ** p  (EUP path)

    is_last = s == n_s - 1

    # Non-last tiles: plain full-rate VALU accumulate (no mask, no reduce).
    @pl.when(jnp.logical_not(is_last))
    def _():
        acc_ref[...] += xp

    # Last tile: mask padded spatial columns (only here), reduce, GeM^(1/p),
    # and the C -> 1 head as a VPU/XLU reduce (no N=1 MXU matmul).
    @pl.when(is_last)
    def _():
        if last_valid < xp.shape[-1]:                  # trace-time decision
            lane = lax.broadcasted_iota(jnp.int32, (1, xp.shape[-1]), 1)
            xp_last = jnp.where(lane < last_valid, xp, 0.0)
        else:
            xp_last = xp
        total = acc_ref[...] + xp_last                 # (OutC, TS)
        ch_sum = jnp.sum(total, axis=-1, keepdims=True)   # (OutC, 1)
        pooled = ch_sum * (1.0 / s_valid)              # avg pool over spatial
        pooled = jnp.maximum(pooled, 1e-30)            # guard log underflow
        g = jnp.exp(jnp.log(pooled) / p)               # ** (1/p) -> GeM feats
        logit = jnp.sum(g * hw_ref[...], axis=0, keepdims=True) + hb_ref[0]
        o_ref[...] = logit[None]                       # (1, 1, 1)


# --------------------------------------------------------------------------
# Forward: lightweight K-major im2col (wrapper glue) + fused Pallas kernel
# --------------------------------------------------------------------------
def aptos_forward(img_nchw, conv_w, conv_b, p, head_w, head_b,
                  *, stride=2, ts=8192, compute_dtype=jnp.bfloat16):
    B, C, H, W = img_nchw.shape
    OutC, InC, KH, KW = conv_w.shape
    assert InC == C
    OH = (H - KH) // stride + 1
    OW = (W - KW) // stride + 1
    S = OH * OW
    K = C * KH * KW                                    # 27; NOT padded in HBM

    # Cast the raw image once (half-width im2col passes, bf16 MXU feed).
    img_b = img_nchw.astype(compute_dtype)

    # ---- im2col in [B, K, S] (spatial-minor) layout; k = (c, kh, kw) matches
    #      conv_w.reshape(OutC, C*KH*KW).  No transpose pass needed. ----
    taps = []
    for i in range(KH):
        for j in range(KW):
            taps.append(
                img_b[:, :, i:i + stride * (OH - 1) + 1:stride,
                            j:j + stride * (OW - 1) + 1:stride]
            )                                          # (B, C, OH, OW)
    col = jnp.stack(taps, axis=2)                      # (B, C, KH*KW, OH, OW)
    col = col.reshape(B, K, S)                         # (B, 27, S)

    # ---- spatial tiling over the reduction (lane) axis ----
    ts = max(128, min(_round_up(ts, 128), _round_up(S, 128)))
    S_pad = _round_up(S, ts)
    n_s = S_pad // ts
    last_valid = S - (n_s - 1) * ts                    # valid cols in last tile
    if S_pad != S:
        col = jnp.pad(col, ((0, 0), (0, 0), (0, S_pad - S)))

    w2t = conv_w.reshape(OutC, K).astype(compute_dtype)        # (OutC, K)
    b2 = conv_b.reshape(OutC, 1).astype(jnp.float32)
    hw = head_w.reshape(OutC, 1).astype(jnp.float32)
    p_s = p.reshape(1).astype(jnp.float32)
    hb_s = head_b.reshape(1).astype(jnp.float32)

    kernel = functools.partial(_fused_conv_gem_head_kernel,
                               s_valid=S, last_valid=last_valid)

    itemsize = jnp.dtype(compute_dtype).itemsize
    cost = pl.CostEstimate(
        flops=int(2 * B * S_pad * K * OutC),
        transcendentals=int(2 * B * S_pad * OutC),
        bytes_accessed=int(B * K * S_pad * itemsize
                           + K * OutC * itemsize + 2 * OutC * 4 + B * 4),
    )

    out = pl.pallas_call(
        kernel,
        out_shape=jax.ShapeDtypeStruct((B, 1, 1), jnp.float32),
        grid_spec=pltpu.PrefetchScalarGridSpec(
            num_scalar_prefetch=0,
            grid=(B, n_s),
            in_specs=[
                pl.BlockSpec((1, K, ts), lambda b, s: (b, 0, s)),     # patches
                # NOTE(v5e): if DMA latency is still exposed, add
                # pipeline_mode=pl.Buffered(3) to the patch spec above.
                pl.BlockSpec((OutC, K), lambda b, s: (0, 0)),         # conv w
                pl.BlockSpec((OutC, 1), lambda b, s: (0, 0)),         # conv b
                pl.BlockSpec((OutC, 1), lambda b, s: (0, 0)),         # head w
                pl.BlockSpec(memory_space=pltpu.MemorySpace.SMEM),    # p
                pl.BlockSpec(memory_space=pltpu.MemorySpace.SMEM),    # head b
            ],
            out_specs=pl.BlockSpec((1, 1, 1), lambda b, s: (b, 0, 0)),
            scratch_shapes=[pltpu.VMEM((OutC, ts), jnp.float32)],
        ),
        compiler_params=pltpu.CompilerParams(
            # B is embarrassingly parallel; the spatial axis carries the GeM
            # accumulator -> "arbitrary".
            dimension_semantics=("parallel", "arbitrary"),
            # ~2.5 MiB actually used; modest explicit budget fits every gen
            # (incl. v7x's 64 MiB physical VMEM).
            vmem_limit_bytes=32 * 1024 * 1024,
        ),
        cost_estimate=cost,
    )(col, w2t, b2, hw, p_s, hb_s)
    return out.reshape(B, 1)


# --------------------------------------------------------------------------
# Pure-JAX reference (for correctness checking)
# --------------------------------------------------------------------------
def _ref_forward(img_nchw, conv_w, conv_b, p, head_w, head_b):
    feat = lax.conv_general_dilated(
        img_nchw, conv_w, window_strides=(2, 2), padding="VALID",
        dimension_numbers=("NCHW", "OIHW", "NCHW"))
    feat = jnp.maximum(feat + conv_b[None, :, None, None], 0.0)   # [B,C,OH,OW]
    x = jnp.clip(feat, EPS, None) ** p[0]
    pooled = jnp.mean(x, axis=(2, 3))                             # [B, C]
    g = pooled ** (1.0 / p[0])
    return g @ head_w + head_b[None, :]


if __name__ == "__main__":
    key = jax.random.PRNGKey(0)
    k1, k2, k3, k4, k5 = jax.random.split(key, 5)

    B, InC, H, W = 2, 3, 16, 16
    StemC = 32

    img = jax.random.normal(k1, (B, InC, H, W), jnp.float32)
    conv_w = jax.random.normal(k2, (StemC, InC, 3, 3), jnp.float32) * 0.1
    conv_b = jax.random.normal(k3, (StemC,), jnp.float32) * 0.1
    p = jnp.ones((1,), jnp.float32) * 3.0                 # GeM p (init = 3)
    head_w = jax.random.normal(k4, (StemC, 1), jnp.float32) * 0.1
    head_b = jax.random.normal(k5, (1,), jnp.float32) * 0.1

    fwd = jax.jit(aptos_forward)
    out = fwd(img, conv_w, conv_b, p, head_w, head_b)
    out = jax.block_until_ready(out)
    assert out.shape == (B, 1), out.shape

    ref = _ref_forward(img, conv_w, conv_b, p, head_w, head_b)
    assert jnp.allclose(out, ref, rtol=2e-2, atol=2e-2), (out, ref)

    print("KERNEL_OK")
</pallas_src>

<mosaic_0001>
module attributes {stable_mosaic.version = 11 : i64} {
  func.func @_fused_conv_gem_head_kernel(%arg0: i32, %arg1: i32, %arg2: memref<1x27x128xbf16, #tpu.memory_space<vmem>>, %arg3: memref<32x27xbf16, #tpu.memory_space<vmem>>, %arg4: memref<32x1xf32, #tpu.memory_space<vmem>>, %arg5: memref<32x1xf32, #tpu.memory_space<vmem>>, %arg6: memref<1xf32, #tpu.memory_space<smem>>, %arg7: memref<1xf32, #tpu.memory_space<smem>>, %arg8: memref<1x1x1xf32, #tpu.memory_space<vmem>>, %arg9: memref<32x128xf32, #tpu.memory_space<vmem>>) attributes {dimension_semantics = [#tpu.dimension_semantics<parallel>, #tpu.dimension_semantics<arbitrary>], iteration_bounds = array<i64: 2, 1>, scalar_prefetch = 0 : i64, scratch_operands = 1 : i64, tpu.core_type = #tpu.core_type<tc>, window_params = [{transform_indices = @transform_0, window_bounds = array<i64: 1, 27, 128>}, {pipeline_mode = #tpu.pipeline_mode<synchronous>, transform_indices = @transform_1, window_bounds = array<i64: 32, 27>}, {pipeline_mode = #tpu.pipeline_mode<synchronous>, transform_indices = @transform_2, window_bounds = array<i64: 32, 1>}, {pipeline_mode = #tpu.pipeline_mode<synchronous>, transform_indices = @transform_3, window_bounds = array<i64: 32, 1>}, {transform_indices = @transform_4, window_bounds = array<i64: 1>}, {transform_indices = @transform_5, window_bounds = array<i64: 1>}, {transform_indices = @transform_6, window_bounds = array<i64: 1, 1, 1>}]} {
    %c0_i32 = arith.constant 0 : i32
    %0 = arith.cmpi eq, %arg1, %c0_i32 : i32
    %1 = arith.extui %0 : i1 to i32
    %c0_i32_0 = arith.constant 0 : i32
    %2 = arith.cmpi ne, %1, %c0_i32_0 : i32
    scf.if %2 {
      %cst_12 = arith.constant 0.000000e+00 : f32
      %23 = vector.broadcast %cst_12 : f32 to vector<32x128xf32>
      %c0_13 = arith.constant 0 : index
      %c0_14 = arith.constant 0 : index
      %24 = vector.load %arg9[%c0_13, %c0_14] : memref<32x128xf32, #tpu.memory_space<vmem>>, vector<32x128xf32>
      tpu.vector_store %arg9[%c0_13, %c0_14], %23 {strides = array<i32>} : memref<32x128xf32, #tpu.memory_space<vmem>>, vector<32x128xf32>,
    } else {
    }
    %c0 = arith.constant 0 : index
    %c0_1 = arith.constant 0 : index
    %3 = vector.load %arg3[%c0, %c0_1] : memref<32x27xbf16, #tpu.memory_space<vmem>>, vector<32x27xbf16>
    %c0_2 = arith.constant 0 : index
    %c0_3 = arith.constant 0 : index
    %c0_4 = arith.constant 0 : index
    %4 = vector.load %arg2[%c0_2, %c0_3, %c0_4] : memref<1x27x128xbf16, #tpu.memory_space<vmem>>, vector<1x27x128xbf16>
    %5 = vector.shape_cast %4 : vector<1x27x128xbf16> to vector<27x128xbf16>
    %cst = arith.constant dense<0.000000e+00> : vector<32x128xf32>
    %6 = tpu.matmul %3, %5, %cst {dimension_numbers = #tpu.dot_dimension_numbers<[1], [0], [0], [1], [0, 0, 1, 1], [], []>} : vector<32x27xbf16>, vector<27x128xbf16>, vector<32x128xf32> -> vector<32x128xf32>
    %c0_5 = arith.constant 0 : index
    %c0_6 = arith.constant 0 : index
    %7 = vector.load %arg4[%c0_5, %c0_6] : memref<32x1xf32, #tpu.memory_space<vmem>>, vector<32x1xf32>
    %8 = vector.broadcast %7 : vector<32x1xf32> to vector<32x128xf32>
    %9 = arith.addf %6, %8 : vector<32x128xf32>
    %cst_7 = arith.constant 9.99999997E-7 : f32
    %10 = vector.broadcast %cst_7 : f32 to vector<32x128xf32>
    %11 = arith.maximumf %9, %10 : vector<32x128xf32>
    %c0_8 = arith.constant 0 : index
    %12 = memref.load %arg6[%c0_8] : memref<1xf32, #tpu.memory_space<smem>>
    %13 = math.log %11 : vector<32x128xf32>
    %14 = vector.broadcast %12 : f32 to vector<32x128xf32>
    %15 = arith.mulf %14, %13 : vector<32x128xf32>
    %16 = math.exp %15 : vector<32x128xf32>
    %c0_i32_9 = arith.constant 0 : i32
    %17 = arith.cmpi eq, %arg1, %c0_i32_9 : i32
    %true = arith.constant true
    %18 = arith.xori %17, %true : i1
    %19 = arith.extui %18 : i1 to i32
    %c0_i32_10 = arith.constant 0 : i32
    %20 = arith.cmpi ne, %19, %c0_i32_10 : i32
    scf.if %20 {
      %c0_12 = arith.constant 0 : index
      %c0_13 = arith.constant 0 : index
      %23 = vector.load %arg9[%c0_12, %c0_13] : memref<32x128xf32, #tpu.memory_space<vmem>>, vector<32x128xf32>
      %24 = arith.addf %23, %16 : vector<32x128xf32>
      %c0_14 = arith.constant 0 : index
      %c0_15 = arith.constant 0 : index
      %25 = vector.load %arg9[%c0_14, %c0_15] : memref<32x128xf32, #tpu.memory_space<vmem>>, vector<32x128xf32>
      tpu.vector_store %arg9[%c0_14, %c0_15], %24 {strides = array<i32>} : memref<32x128xf32, #tpu.memory_space<vmem>>, vector<32x128xf32>,
    } else {
    }
    %21 = arith.extui %17 : i1 to i32
    %c0_i32_11 = arith.constant 0 : i32
    %22 = arith.cmpi ne, %21, %c0_i32_11 : i32
    scf.if %22 {
      %23 = tpu.iota {dimensions = array<i32: 1>} : vector<1x128xi32>
      %c49_i32 = arith.constant 49 : i32
      %24 = vector.broadcast %c49_i32 : i32 to vector<1x128xi32>
      %25 = arith.cmpi slt, %23, %24 : vector<1x128xi32>
      %cst_12 = arith.constant 0.000000e+00 : f32
      %26 = vector.shape_cast %25 : vector<1x128xi1> to vector<1x128xi1>
      %27 = vector.broadcast %26 : vector<1x128xi1> to vector<32x128xi1>
      %28 = vector.broadcast %cst_12 : f32 to vector<32x128xf32>
      %29 = arith.select %27, %16, %28 : vector<32x128xi1>, vector<32x128xf32>
      %c0_13 = arith.constant 0 : index
      %c0_14 = arith.constant 0 : index
      %30 = vector.load %arg9[%c0_13, %c0_14] : memref<32x128xf32, #tpu.memory_space<vmem>>, vector<32x128xf32>
      %31 = arith.addf %30, %29 : vector<32x128xf32>
      %cst_15 = arith.constant dense<0.000000e+00> : vector<32xf32>
      %32 = vector.multi_reduction <add>, %31, %cst_15 [1] : vector<32x128xf32> to vector<32xf32>
      %33 = vector.shape_cast %32 : vector<32xf32> to vector<32x1xf32>
      %cst_16 = arith.constant 0.0204081628 : f32
      %34 = vector.broadcast %cst_16 : f32 to vector<32x1xf32>
      %35 = arith.mulf %33, %34 : vector<32x1xf32>
      %cst_17 = arith.constant 1.000000e-30 : f32
      %36 = vector.broadcast %cst_17 : f32 to vector<32x1xf32>
      %37 = arith.maximumf %35, %36 : vector<32x1xf32>
      %38 = math.log %37 : vector<32x1xf32>
      %39 = vector.broadcast %12 : f32 to vector<32x1xf32>
      %40 = arith.divf %38, %39 : vector<32x1xf32>
      %41 = math.exp %40 : vector<32x1xf32>
      %c0_18 = arith.constant 0 : index
      %c0_19 = arith.constant 0 : index
      %42 = vector.load %arg5[%c0_18, %c0_19] : memref<32x1xf32, #tpu.memory_space<vmem>>, vector<32x1xf32>
      %43 = arith.mulf %41, %42 : vector<32x1xf32>
      %cst_20 = arith.constant dense<0.000000e+00> : vector<1xf32>
      %44 = vector.multi_reduction <add>, %43, %cst_20 [0] : vector<32x1xf32> to vector<1xf32>
      %45 = vector.shape_cast %44 : vector<1xf32> to vector<1x1xf32>
      %c0_21 = arith.constant 0 : index
      %46 = memref.load %arg7[%c0_21] : memref<1xf32, #tpu.memory_space<smem>>
      %47 = vector.broadcast %46 : f32 to vector<1x1xf32>
      %48 = arith.addf %45, %47 : vector<1x1xf32>
      %49 = vector.shape_cast %48 : vector<1x1xf32> to vector<1x1x1xf32>
      %c0_22 = arith.constant 0 : index
      %c0_23 = arith.constant 0 : index
      %c0_24 = arith.constant 0 : index
      %50 = vector.load %arg8[%c0_22, %c0_23, %c0_24] : memref<1x1x1xf32, #tpu.memory_space<vmem>>, vector<1x1x1xf32>
      tpu.vector_store %arg8[%c0_22, %c0_23, %c0_24], %49 {strides = array<i32>} : memref<1x1x1xf32, #tpu.memory_space<vmem>>, vector<1x1x1xf32>,
    } else {
    }
    return
  }
  func.func @transform_0(%arg0: i32, %arg1: i32) -> (i32, i32, i32) {
    %c0_i32 = arith.constant 0 : i32
    %c0_i32_0 = arith.constant 0 : i32
    return %arg0, %c0_i32, %arg1 : i32, i32, i32
  }
  func.func @transform_1(%arg0: i32, %arg1: i32) -> (i32, i32) {
    %c0_i32 = arith.constant 0 : i32
    %c0_i32_0 = arith.constant 0 : i32
    %c0_i32_1 = arith.constant 0 : i32
    return %c0_i32, %c0_i32_0 : i32, i32
  }
  func.func @transform_2(%arg0: i32, %arg1: i32) -> (i32, i32) {
    %c0_i32 = arith.constant 0 : i32
    %c0_i32_0 = arith.constant 0 : i32
    %c0_i32_1 = arith.constant 0 : i32
    return %c0_i32, %c0_i32_0 : i32, i32
  }
  func.func @transform_3(%arg0: i32, %arg1: i32) -> (i32, i32) {
    %c0_i32 = arith.constant 0 : i32
    %c0_i32_0 = arith.constant 0 : i32
    %c0_i32_1 = arith.constant 0 : i32
    return %c0_i32, %c0_i32_0 : i32, i32
  }
  func.func @transform_4(%arg0: i32, %arg1: i32) -> i32 {
    %c0_i32 = arith.constant 0 : i32
    %c0_i32_0 = arith.constant 0 : i32
    return %c0_i32 : i32
  }
  func.func @transform_5(%arg0: i32, %arg1: i32) -> i32 {
    %c0_i32 = arith.constant 0 : i32
    %c0_i32_0 = arith.constant 0 : i32
    return %c0_i32 : i32
  }
  func.func @transform_6(%arg0: i32, %arg1: i32) -> (i32, i32, i32) {
    %c0_i32 = arith.constant 0 : i32
    %c0_i32_0 = arith.constant 0 : i32
    %c0_i32_1 = arith.constant 0 : i32
    return %arg0, %c0_i32, %c0_i32_0 : i32, i32, i32
  }
}

</mosaic_0001>

<bundles_post_ra>
// kernel: aptos_forward.1
= control target key start
LH: loop header
LB: loop body
LE: loop exit
PB: predicated region body
PF: predicated region fallthrough
CT: control target
= control target key end

     0   :  { %s746_s25 = smov 0   ;;  %s748_s26 = smov 0   ;;  %s816_s0 = inlined_call_operand.vmem [shape: bf16[2,27,128], index: 0, kind: input, shape index: {}]   ;;  %s817_s1 = inlined_call_operand.vmem [shape: bf16[32,27], index: 1, kind: input, shape index: {}]   ;;  %s818_s2 = inlined_call_operand.vmem [shape: f32[32,1], index: 2, kind: input, shape index: {}]   ;;  %s819_s3 = inlined_call_operand.vmem [shape: f32[32,1], index: 3, kind: input, shape index: {}]   ;;  %s820_s4 = inlined_call_operand.<no memory space> [shape: f32[1], index: 4, kind: input, shape index: {}]   ;;  %s821_s5 = inlined_call_operand.<no memory space> [shape: f32[1], index: 5, kind: input, shape index: {}]   ;;  %s822_s6 = inlined_call_operand.vmem [shape: f32[2,1,1], index: 6, kind: output, shape index: {}]  }
   0x1   :  { %11 = sst [smem:[#allocation3]] %s820_s4  ;;  %s750_s27 = smov 0  }
   0x2   :  { %12 = sst [smem:[#allocation4]] %s821_s5 }
   0x3 LB: > { %s30_s4 = sadd.s32 1, %s697_s26  ;;  %p589_p0 = scmp.ge.s32.totalorder %s701_s27, 1  ;;  %s701_s27 = sphi %s750_s27, %s18_s27   ;;  %s697_s26 = sphi %s748_s26, %s824_s26   ;;  %s693_s25 = sphi %s746_s25, %s823_s25  }
   0x4   : > { %p32_p1 = scmp.ge.s32.totalorder %s30_s4, 2  ;;  %p231_p2 = scmp.lt.s32.totalorder %s701_s27, 3 }
   0x6   : > { %s826_s4 = smov (%p32_p1, %s30_s4), 0  ;;  %p232_p3 = pnand %p589_p0, %p231_p2 }
   0x7   : > { %p262_p4 = scmp.lt.s32.totalorder (!%p232_p3), %s693_s25, 1  ;;  %vm342_vm0 = vcmask (!%p232_p3), 1044480   ;;  %v643_v0 = vld [vmem:[%s817_s1] sm:$0xff] (!%p232_p3)   ;;  %vm335_vm1 = vcmask (!%p232_p3), 220160   ;;  %vm343_vm2 = vcmask (!%p232_p3), 1045504   ;;  %v703_v1 = vmov (!%p232_p3), 65535  }
   0x8   : > { %235 = sbr.rel (%p232_p3) target bundleno = 475 (0x1db), region = 44  ;;  %v344_v2 = vsel (!%p232_p3), %vm342_vm0, 4294967295, %v703_v1  ;;  %609 = vmatprep.mubr.msk.bf16.mxu0 (!%p232_p3), %vm335_vm1, %v643_v0  ;;  %v290_v3 = vld [vmem:[%s818_s2] sm:$0xff] (!%p232_p3)  ;;  %v292_v4 = vld [vmem:[%s818_s2 + $0x10] sm:$0xff] (!%p232_p3)  ;;  %v704_v5 = vmov (!%p232_p3), 0   ;;  %v291_v6 = vld [vmem:[%s818_s2 + $0x8] sm:$0xff] (!%p232_p3)  ;;  %v443_v45 = vlaneseq (!%p232_p3) }
   0x9   : > { %639 = vset.pattern.permute.xlu0 (!%p232_p3), %v704_v5  ;;  %640 = vset.pattern.permute.xlu1 (!%p232_p3), %v704_v5  ;;  %v293_v7 = vld [vmem:[%s818_s2 + $0x18] sm:$0xff] (!%p232_p3)  ;;  %v345_v9 = vsel (!%p232_p3), %vm343_vm2, %v344_v2, 0  ;;  %v644_v12 = vld [vmem:[%s817_s1 + $0x8] sm:$0xff] (!%p232_p3)   ;;  %s402_s19 = sld [smem:[#allocation3]] (!%p232_p3)  ;;  %vm505_vm4 = vcmask (!%p232_p3), 7168   ;;  %vm522_vm5 = vcmask (!%p232_p3), 0  }
   0xa   : > { %296 = vperm.xlu0 (!%p232_p3), %639, %v290_v3   ;;  %306 = vperm.xlu1 (!%p232_p3), %640, %v292_v4   ;;  %v444_v47 = vand.u32 (!%p232_p3), 127, %v443_v45  ;;  %s519_s30 = sld [smem:[#allocation4]] (!%p232_p3) }
   0xc   : > { %vm445_vm3 = vcmp.lt.s32.totalorder (!%p232_p3), %v444_v47, 49 }
   0xe   : > { %301 = vperm.xlu0 (!%p232_p3), %639, %v291_v6   ;;  %311 = vperm.xlu1 (!%p232_p3), %640, %v293_v7  }
   0xf   : > { %s828_s25 = smov (!%p262_p4, %s693_s25), 1  ;;  %v411_v30 = vstv %s402_s19 }
  0x10   : > { %s600_s9 = sshll.u32 %s828_s25, 4  ;;  %v520_v45 = vstv %s519_s30 }
  0x11   : > { %s269_s12 = scalar_lea.vmem %s816_s0, %s600_s9  ;;  %s272_s9 = scalar_lea.vmem %s822_s6, %s828_s25 }
  0x12   : > { %v641_v8 = vld [vmem:[%s269_s12] sm:$0xff]   ;;  %v642_v10 = vld [vmem:[%s269_s12 + $0x8] sm:$0x3f]  }
  0x13   : > { %605 = vmatprep.subr.bf16.mxu0 %v641_v8  ;;  %v347_v11 = vand.u32 %v642_v10, %v345_v9 }
  0x14   : > { %606 = vmatpush3.bf16.msra.mxu0 %v641_v8 }
  0x15   : > { %607 = vmatprep.subr.bf16.mxu0 %v347_v11 }
  0x18   : > { %608 = vmatpush3.bf16.msra.mxu0 %v347_v11 }
  0x1b   : > { %610 = vmatmul.mubr.msk.bf16.vlgmr.msra.gmra.mrb[0].mxu0 %vm335_vm1, %v644_v12 }
  0x89   : > { %v307_v13 = vpop.permute.xlu1 %306  ;;  %v297_v14 = vpop.permute.xlu0 %296 }
  0x8d   : > { %v312_v16 = vpop.permute.xlu1 %311  ;;  %v302_v22 = vpop.permute.xlu0 %301 }
  0xee   : > { %v611_v15 = vpop.f32.mrb[0].mxu0 }
  0xef   : > { %v392_v17 = vadd.f32 %v611_v15, %v307_v13  ;;  %v383_v18 = vpop.f32.mrb[1].mxu0 }
  0xf0   : > { %v384_v19 = vadd.f32 %v383_v18, %v297_v14  ;;  %v612_v20 = vpop.f32.mrb[2].mxu0 }
  0xf1   : > { %v400_v21 = vmax.f32 %v392_v17, 1e-06  ;;  %v395_v23 = vadd.f32 %v612_v20, %v312_v16  ;;  %v386_v24 = vpop.f32.mrb[3].mxu0 }
  0xf2   : > { %v398_v25 = vmax.f32 %v384_v19, 1e-06  ;;  %v387_v26 = vadd.f32 %v386_v24, %v302_v22 }
  0xf3   : > { %645 = vlog2.f32 %v400_v21  ;;  %v401_v27 = vmax.f32 %v395_v23, 1e-06  ;;  %v497_v21 = vld [vmem:[%s819_s3] sm:$0xff]  ;;  %v498_v23 = vld [vmem:[%s819_s3 + $0x8] sm:$0xff] }
  0xf4   : > { %647 = vlog2.f32 %v398_v25  ;;  %v399_v28 = vmax.f32 %v387_v26, 1e-06  ;;  %v499_v26 = vld [vmem:[%s819_s3 + $0x10] sm:$0xff] }
  0xf5   : > { %649 = vlog2.f32 %v401_v27 }
  0xf6   : > { %651 = vlog2.f32 %v399_v28 }
  0xfd   : > { %v646_v29 = vpop.eup %645 }
  0xfe   : > { %v648_v31 = vpop.eup %647  ;;  %v408_v32 = vmul.f32 0.6931472, %v646_v29 }
  0xff   : > { %v650_v33 = vpop.eup %649  ;;  %v404_v34 = vmul.f32 0.6931472, %v648_v31 }
 0x100   : > { %v652_v35 = vpop.eup %651  ;;  %v414_v36 = vmul.f32 %v411_v30, %v408_v32  ;;  %v410_v37 = vmul.f32 0.6931472, %v650_v33  ;;  %v500_v33 = vld [vmem:[%s819_s3 + $0x18] sm:$0xff] }
 0x101   : > { %v412_v38 = vmul.f32 %v411_v30, %v404_v34  ;;  %v406_v39 = vmul.f32 0.6931472, %v652_v35 }
 0x102   : > { %v420_v40 = vmul.f32 1.442695, %v414_v36  ;;  %v415_v42 = vmul.f32 %v411_v30, %v410_v37 }
 0x103   : > { %v416_v41 = vmul.f32 1.442695, %v412_v38  ;;  %v413_v43 = vmul.f32 %v411_v30, %v406_v39 }
 0x104   : > { %v422_v46 = vmul.f32 1.442695, %v415_v42 }
 0x105   : > { %653 = vpow2.f32 %v416_v41  ;;  %v418_v44 = vmul.f32 1.442695, %v413_v43 }
 0x106   : > { %655 = vpow2.f32 %v420_v40 }
 0x107   : > { %657 = vpow2.f32 %v418_v44 }
 0x108   : > { %659 = vpow2.f32 %v422_v46 }
 0x109   : > { %661 = vrcp.f32 %v411_v30 }
 0x10f   : > { %v654_v48 = vpop.eup %653 }
 0x110   : > { %v656_v49 = vpop.eup %655  ;;  %v448_v50 = vsel %vm445_vm3, %v654_v48, 0.0 }
 0x111   : > { %v658_v51 = vpop.eup %657  ;;  %460 = vadd.xlane.f32.xlu0 %v448_v50  ;;  %v450_v53 = vsel %vm445_vm3, %v656_v49, 0.0 }
 0x112   : > { %v449_v52 = vsel %vm445_vm3, %v658_v51, 0.0  ;;  %v660_v54 = vpop.eup %659 }
 0x113   : > { %462 = vadd.xlane.f32.xlu1 %v449_v52  ;;  %v451_v55 = vsel %vm445_vm3, %v660_v54, 0.0  ;;  %v662_v4 = vpop.eup %661 }
 0x115   : > { %464 = vadd.xlane.f32.xlu0 %v450_v53 }
 0x119   : > { %466 = vadd.xlane.f32.xlu0 %v451_v55 }
 0x19e   : > { %v461_v56 = vpop.xlane.xlu0 %460 }
 0x19f   : > { %v468_v57 = vmul.f32 0.020408163, %v461_v56 }
 0x1a0   : > { %v463_v58 = vpop.xlane.xlu1 %462 }
 0x1a1   : > { %v472_v59 = vmax.f32 %v468_v57, 1e-30  ;;  %v469_v60 = vmul.f32 0.020408163, %v463_v58 }
 0x1a2   : > { %v465_v61 = vpop.xlane.xlu0 %464 }
 0x1a3   : > { %663 = vlog2.f32 %v472_v59  ;;  %v473_v62 = vmax.f32 %v469_v60, 1e-30  ;;  %v470_v63 = vmul.f32 0.020408163, %v465_v61 }
 0x1a5   : > { %665 = vlog2.f32 %v473_v62  ;;  %v474_v0 = vmax.f32 %v470_v63, 1e-30 }
 0x1a6   : > { %v467_v1 = vpop.xlane.xlu0 %466 }
 0x1a7   : > { %667 = vlog2.f32 %v474_v0  ;;  %v471_v2 = vmul.f32 0.020408163, %v467_v1 }
 0x1a9   : > { %v475_v3 = vmax.f32 %v471_v2, 1e-30 }
 0x1ab   : > { %669 = vlog2.f32 %v475_v3 }
 0x1ad   : > { %v664_v5 = vpop.eup %663 }
 0x1ae   : > { %v477_v6 = vmul.f32 0.6931472, %v664_v5 }
 0x1af   : > { %v666_v7 = vpop.eup %665 }
 0x1b0   : > { %v485_v8 = vmul.f32 %v662_v4, %v477_v6  ;;  %v479_v9 = vmul.f32 0.6931472, %v666_v7 }
 0x1b1   : > { %v668_v10 = vpop.eup %667 }
 0x1b2   : > { %v489_v11 = vmul.f32 1.442695, %v485_v8  ;;  %v486_v12 = vmul.f32 %v662_v4, %v479_v9  ;;  %v481_v13 = vmul.f32 0.6931472, %v668_v10 }
 0x1b4   : > { %671 = vpow2.f32 %v489_v11  ;;  %v491_v14 = vmul.f32 1.442695, %v486_v12  ;;  %v487_v15 = vmul.f32 %v662_v4, %v481_v13 }
 0x1b5   : > { %v670_v16 = vpop.eup %669 }
 0x1b6   : > { %673 = vpow2.f32 %v491_v14  ;;  %v493_v17 = vmul.f32 1.442695, %v487_v15  ;;  %v483_v18 = vmul.f32 0.6931472, %v670_v16 }
 0x1b8   : > { %675 = vpow2.f32 %v493_v17  ;;  %v488_v19 = vmul.f32 %v662_v4, %v483_v18 }
 0x1ba   : > { %v495_v20 = vmul.f32 1.442695, %v488_v19 }
 0x1bc   : > { %677 = vpow2.f32 %v495_v20 }
 0x1be   : > { %v672_v22 = vpop.eup %671 }
 0x1bf   : > { %v501_v24 = vmul.f32 %v672_v22, %v497_v21 }
 0x1c0   : > { %v674_v25 = vpop.eup %673 }
 0x1c1   : > { %v502_v27 = vmul.f32 %v674_v25, %v498_v23  ;;  %v506_v29 = vsel %vm505_vm4, %v501_v24, 0.0 }
 0x1c2   : > { %v676_v28 = vpop.eup %675 }
 0x1c3   : > { %v507_v30 = vsel %vm505_vm4, %v502_v27, 0.0  ;;  %v503_v31 = vmul.f32 %v676_v28, %v499_v26 }
 0x1c4   : > { %v508_v32 = vadd.f32 %v507_v30, %v506_v29 }
 0x1c5   : > { %v509_v34 = vsel %vm505_vm4, %v503_v31, 0.0 }
 0x1c6   : > { %v678_v35 = vpop.eup %677  ;;  %v510_v37 = vadd.f32 %v509_v34, %v508_v32 }
 0x1c7   : > { %v504_v36 = vmul.f32 %v678_v35, %v500_v33 }
 0x1c9   : > { %v511_v38 = vsel %vm505_vm4, %v504_v36, 0.0 }
 0x1ca   : > { %v512_v39 = vadd.f32 %v511_v38, %v510_v37 }
 0x1cc   : > { %v513_v40 = vrot.slane %v512_v39, 4 }
 0x1ce   : > { %v514_v41 = vadd.f32 %v513_v40, %v512_v39 }
 0x1d0   : > { %v515_v42 = vrot.slane %v514_v41, 2 }
 0x1d2   : > { %v516_v43 = vadd.f32 %v515_v42, %v514_v41 }
 0x1d4   : > { %v517_v44 = vrot.slane %v516_v43, 1 }
 0x1d6   : > { %v518_v46 = vadd.f32 %v517_v44, %v516_v43 }
 0x1d8   : > { %v521_v47 = vadd.f32 %v520_v45, %v518_v46 }
 0x1da   : > { %523 = vst.msk [vmem:[%s272_s9] sm:$0x1] %vm522_vm5, %v521_v47 }
 0x1db PF: > { %s18_s27 = sadd.s32 1, %s701_s27   ;;  %s823_s25 = smov %s697_s26 }
 0x1dc   : > { %p15_p5 = scmp.ge.s32.totalorder %s18_s27, 4   ;;  %s824_s26 = smov %s826_s4 }
 0x1de   :  { %17 = sbr.rel (!%p15_p5) target bundleno = 3 (0x3), region = 86 }

</bundles_post_ra>
